<compile_context>
chip_gen: v7x
topology: tpu7x:2x2x1
jax: 0.10.0
libtpu: 0.0.40
codegen_flags: <defaults>
</compile_context>

<pallas_src>
import functools

import jax
import jax.numpy as jnp
from jax.experimental import pallas as pl
from jax.experimental.pallas import tpu as pltpu

_LANE = 128
_MIB = 1024 * 1024
_SQRT_HALF = 0.7071067811865476

# Rough, generation-agnostic rates used only to *rank* tile candidates at
# trace time (relative ordering is what matters, not absolute accuracy).
_HBM_BW = 1.2e12         # bytes/s
_VMEM_BW = 1.0e13        # bytes/s (f32 accumulator read-modify-write)
_MXU_FLOPS = 3.0e14      # flop/s
_STEP_OVERHEAD_S = 0.35e-6


def _round_up(x, n):
    return (x + n - 1) // n * n


def _sublane(dtype):
    # sublane packing multiple for the second-minor dim
    return {4: 8, 2: 16, 1: 32}.get(jnp.dtype(dtype).itemsize, 8)


def _tpu_generation():
    """(vmem_capacity_bytes, tensorcores_per_chip) with safe fallbacks."""
    vmem_bytes = 64 * _MIB        # conservative (v7x) fallback
    num_cores = 2                 # conservative: assume row split may help
    try:
        v = int(pltpu.get_tpu_info().vmem_capacity_bytes)
        if v > 0:
            vmem_bytes = v
    except Exception:
        pass
    try:
        kind = jax.devices()[0].device_kind.lower()
        single_tc = ("v5e" in kind or "v5 lite" in kind or "v5lite" in kind
                     or "v6e" in kind or "v6 lite" in kind or "v6lite" in kind)
        num_cores = 1 if single_tc else 2
    except Exception:
        pass
    return vmem_bytes, num_cores


def _tile_candidates(p):
    """Multiples of 128 that divide the (128-padded) dim p, descending."""
    n = p // _LANE
    return [d * _LANE for d in range(n, 0, -1) if n % d == 0]


def _bm_candidates(m, bm_max, sub, num_cores):
    """Row-tile candidates: rows-per-core targets + budget-limited aligned sizes."""
    cap = _round_up(max(m, 1), sub)
    bm_max = max(sub, (min(bm_max, cap) // sub) * sub)
    cands = set()
    targets = [m] + [-(-m // c) for c in range(2, 2 * max(num_cores, 1) + 1)]
    for t in targets:
        v = _round_up(max(t, 1), sub)
        if sub <= v <= bm_max:
            cands.add(v)
    for align in (512, 256, 128, sub):
        v = (bm_max // align) * align
        if v >= sub:
            cands.add(v)
    return sorted(cands, reverse=True)


def _tile_cost(m, in_p, hid_p, out_p, bytes_x, bytes_w, bn, bh, bm, num_cores):
    """Approximate kernel time for a (block_n, block_h, block_m) choice."""
    nj = out_p // bn
    nk = hid_p // bh
    rows = _round_up(max(m, 1), bm)
    ni = rows // bm
    # W1 is refetched per (row tile, N tile); W2 per row tile.
    hbm = (ni * (nj * in_p * hid_p + hid_p * out_p) * bytes_w
           + rows * in_p * bytes_x
           + rows * out_p * bytes_x)
    acc_rmw = rows * out_p * 8 * nk               # f32 acc read+write per k step
    flops = 2 * rows * (nj * in_p * hid_p + hid_p * out_p)  # matmul1 redone per N tile
    t = (hbm / _HBM_BW + acc_rmw / _VMEM_BW + flops / _MXU_FLOPS
         + ni * nj * nk * _STEP_OVERHEAD_S)
    # Parallel (i, j) tiles shard across TensorCores on multi-TC chips.
    return t / max(1, min(num_cores, ni * nj))


def _choose_tiles(m, in_p, hid_p, out_p, bytes_x, bytes_w, budget,
                  num_cores, sub, use_scratch):
    """Pick (block_n, block_h, block_m) minimising the trace-time cost model."""
    best = None
    best_cost = float("inf")
    for bn in _tile_candidates(out_p):
        for bh in _tile_candidates(hid_p):
            # double-buffered weight + bias tiles
            wbytes = 2 * (in_p * bh + bh * bn + bh + bn) * bytes_w
            if wbytes >= budget:
                continue
            per_row = (2 * in_p * bytes_x          # x tile (double-buffered)
                       + 2 * bn * bytes_x          # out tile (double-buffered)
                       + 8 * bh                    # f32 h + elementwise/cast temps
                       + (4 * bn if use_scratch else 0))   # f32 accumulator
            bm_max = (budget - wbytes) // per_row
            if bm_max < sub:
                continue
            for bm in _bm_candidates(m, bm_max, sub, num_cores):
                c = _tile_cost(m, in_p, hid_p, out_p, bytes_x, bytes_w,
                               bn, bh, bm, num_cores)
                if c < best_cost:
                    best_cost = c
                    best = (bn, bh, bm)
    if best is None:
        # Extreme shapes: smallest legal tiles; compile may still need N/K help.
        return _LANE, _LANE, sub
    return best


def _gelu_exact(h):
    # exact (erf-based) GELU in f32, matching nn.GELU(approximate='none').
    return 0.5 * h * (1.0 + jax.lax.erf(h * jnp.float32(_SQRT_HALF)))


def _mlp_kernel_acc(x_ref, w1_ref, b1_ref, w2_ref, b2_ref, o_ref, acc_ref):
    """Low-precision inputs: f32 VMEM accumulator, cast on finalize."""
    k = pl.program_id(2)

    @pl.when(k == 0)
    def _():
        acc_ref[...] = jnp.broadcast_to(
            b2_ref[...].astype(jnp.float32), acc_ref.shape)

    h = jnp.dot(x_ref[...], w1_ref[...], preferred_element_type=jnp.float32)
    h = _gelu_exact(h + b1_ref[...].astype(jnp.float32))
    acc_ref[...] += jnp.dot(h.astype(w2_ref.dtype), w2_ref[...],
                            preferred_element_type=jnp.float32)

    @pl.when(k == pl.num_programs(2) - 1)
    def _():
        o_ref[...] = acc_ref[...].astype(o_ref.dtype)


def _mlp_kernel_f32(x_ref, w1_ref, b1_ref, w2_ref, b2_ref, o_ref):
    """f32 inputs: accumulate directly into the resident output block."""
    k = pl.program_id(2)
    full_f32 = (x_ref.dtype == jnp.float32 and w1_ref.dtype == jnp.float32)
    prec = jax.lax.Precision.HIGHEST if full_f32 else None

    @pl.when(k == 0)
    def _():
        o_ref[...] = jnp.broadcast_to(
            b2_ref[...].astype(o_ref.dtype), o_ref.shape)

    h = jnp.dot(x_ref[...], w1_ref[...],
                preferred_element_type=jnp.float32, precision=prec)
    h = _gelu_exact(h + b1_ref[...].astype(jnp.float32))
    o_ref[...] += jnp.dot(h.astype(w2_ref.dtype), w2_ref[...],
                          preferred_element_type=jnp.float32, precision=prec)


@functools.partial(jax.jit, static_argnames=("block_m",))
def mlp_pallas(x, w1, b1, w2, b2, *, block_m=None):
    """x: (..., in_feat) -> (..., out_feat). Weights are (in, out), biases (1, n)."""
    in_feat = x.shape[-1]
    hid_feat = w1.shape[1]
    out_feat = w2.shape[1]
    lead = x.shape[:-1]
    m = 1
    for d in lead:
        m *= d
    m = max(m, 1)

    bytes_x = jnp.dtype(x.dtype).itemsize
    bytes_w = jnp.dtype(w1.dtype).itemsize
    sub = _sublane(x.dtype)

    # Lane-dense (multiple-of-128) feature dims -> full MXU tiles, unmasked vst.
    in_p = _round_up(in_feat, _LANE)
    hid_p = _round_up(hid_feat, _LANE)
    out_p = _round_up(out_feat, _LANE)

    # Generation-aware budgets: 128 MiB VMEM (v5e/v6e) -> 112/104 MiB,
    # 64 MiB VMEM (v7x) or unknown -> 48/40 MiB.
    vmem_bytes, num_cores = _tpu_generation()
    vmem_limit = max(vmem_bytes - 16 * _MIB, 32 * _MIB)
    tile_budget = max(vmem_limit - 8 * _MIB, 24 * _MIB)

    use_scratch = jnp.dtype(x.dtype) != jnp.dtype(jnp.float32)

    block_n, block_h, bm_auto = _choose_tiles(
        m, in_p, hid_p, out_p, bytes_x, bytes_w, tile_budget,
        num_cores, sub, use_scratch)
    if block_m is None:
        block_m = bm_auto
    else:
        block_m = max(sub, _round_up(int(block_m), sub))

    m_p = _round_up(m, block_m)

    # Zero-padding preserves semantics exactly (padded terms contribute 0.0).
    # Pads are skipped entirely when dims are already aligned.
    x2 = x.reshape(m, in_feat)
    if m_p != m or in_p != in_feat:
        x2 = jnp.pad(x2, ((0, m_p - m), (0, in_p - in_feat)))
    w1p = w1 if (in_p == in_feat and hid_p == hid_feat) else jnp.pad(
        w1, ((0, in_p - in_feat), (0, hid_p - hid_feat)))
    b1p = b1 if hid_p == hid_feat else jnp.pad(b1, ((0, 0), (0, hid_p - hid_feat)))
    w2p = w2 if (hid_p == hid_feat and out_p == out_feat) else jnp.pad(
        w2, ((0, hid_p - hid_feat), (0, out_p - out_feat)))
    b2p = b2 if out_p == out_feat else jnp.pad(b2, ((0, 0), (0, out_p - out_feat)))

    grid = (m_p // block_m, out_p // block_n, hid_p // block_h)

    kernel = _mlp_kernel_acc if use_scratch else _mlp_kernel_f32
    scratch = ([pltpu.VMEM((block_m, block_n), jnp.float32)]
               if use_scratch else [])

    out2 = pl.pallas_call(
        kernel,
        out_shape=jax.ShapeDtypeStruct((m_p, out_p), x.dtype),
        grid_spec=pltpu.PrefetchScalarGridSpec(
            num_scalar_prefetch=0,
            grid=grid,
            in_specs=[
                pl.BlockSpec((block_m, in_p), lambda i, j, k: (i, 0)),
                pl.BlockSpec((in_p, block_h), lambda i, j, k: (0, k)),
                pl.BlockSpec((1, block_h), lambda i, j, k: (0, k)),
                pl.BlockSpec((block_h, block_n), lambda i, j, k: (k, j)),
                pl.BlockSpec((1, block_n), lambda i, j, k: (0, j)),
            ],
            out_specs=pl.BlockSpec((block_m, block_n), lambda i, j, k: (i, j)),
            scratch_shapes=scratch,
        ),
        compiler_params=pltpu.CompilerParams(
            dimension_semantics=("parallel", "parallel", "arbitrary"),
            vmem_limit_bytes=int(vmem_limit),
        ),
    )(x2, w1p, b1p, w2p, b2p)

    if m_p != m or out_p != out_feat:
        out2 = out2[:m, :out_feat]
    return out2.reshape(*lead, out_feat)


def init_mlp_params(key, in_feat, hid_feat=None, out_feat=None, dtype=jnp.float32):
    """nn.Linear-style init; weights stored transposed: (in, out)."""
    if not hid_feat:
        hid_feat = in_feat
    if not out_feat:
        out_feat = in_feat
    k1, k2, k3, k4 = jax.random.split(key, 4)
    bound1 = 1.0 / jnp.sqrt(in_feat)
    bound2 = 1.0 / jnp.sqrt(hid_feat)
    w1 = jax.random.uniform(k1, (in_feat, hid_feat), dtype, -bound1, bound1)
    b1 = jax.random.uniform(k2, (1, hid_feat), dtype, -bound1, bound1)
    w2 = jax.random.uniform(k3, (hid_feat, out_feat), dtype, -bound2, bound2)
    b2 = jax.random.uniform(k4, (1, out_feat), dtype, -bound2, bound2)
    return w1, b1, w2, b2


def mlp_reference(x, w1, b1, w2, b2):
    h = x @ w1 + b1[0]
    h = 0.5 * h * (1.0 + jax.lax.erf(h * jnp.float32(_SQRT_HALF)))
    return h @ w2 + b2[0]


if __name__ == "__main__":
    # Small shapes implied by the forward: token matrix (batch, seq, in_feat).
    batch, seq, in_feat, hid_feat, out_feat = 2, 8, 32, 64, 32

    key = jax.random.PRNGKey(0)
    kx, kp = jax.random.split(key)
    x = jax.random.normal(kx, (batch, seq, in_feat), jnp.float32)
    w1, b1, w2, b2 = init_mlp_params(kp, in_feat, hid_feat, out_feat)

    # f32 path (padded-feature case). precision=HIGHEST is requested in-kernel;
    # the loose-ish tolerance also covers any reduced-precision MXU pass.
    out = jax.block_until_ready(mlp_pallas(x, w1, b1, w2, b2))
    ref = mlp_reference(x.reshape(-1, in_feat), w1, b1, w2, b2).reshape(
        batch, seq, out_feat)
    assert out.shape == (batch, seq, out_feat)
    assert jnp.allclose(out, ref, atol=1e-2, rtol=1e-2), "f32 mismatch vs reference"

    # bf16 smoke test: native-dtype MXU feed with an f32 VMEM accumulator.
    xb = x.astype(jnp.bfloat16)
    w1b, b1b, w2b, b2b = (a.astype(jnp.bfloat16) for a in (w1, b1, w2, b2))
    out_bf16 = jax.block_until_ready(mlp_pallas(xb, w1b, b1b, w2b, b2b))
    assert out_bf16.shape == (batch, seq, out_feat)
    assert jnp.allclose(out_bf16.astype(jnp.float32), ref, atol=1e-1, rtol=1e-1), \
        "bf16 mismatch vs reference"

    # Lane-aligned shapes: exercises the no-padding fast path.
    in2, hid2, out2_feat = 128, 256, 128
    x3 = jax.random.normal(kx, (batch, seq, in2), jnp.float32)
    p3 = init_mlp_params(kp, in2, hid2, out2_feat)
    o3 = jax.block_until_ready(mlp_pallas(x3, *p3))
    r3 = mlp_reference(x3.reshape(-1, in2), *p3).reshape(batch, seq, out2_feat)
    assert jnp.allclose(o3, r3, atol=2e-2, rtol=2e-2), "aligned-shape mismatch"

    # TODO(synk): nn.Dropout with p>0.0 (training mode) would need
    # pltpu.prng_seed + pltpu.prng_random_bits masking; p=0.0 here is identity.
    print("KERNEL_OK")
</pallas_src>

<mosaic_0001>
module attributes {stable_mosaic.version = 11 : i64} {
  func.func @_mlp_kernel_f32(%arg0: i32, %arg1: i32, %arg2: i32, %arg3: memref<8x128xf32, #tpu.memory_space<vmem>>, %arg4: memref<128x128xf32, #tpu.memory_space<vmem>>, %arg5: memref<1x128xf32, #tpu.memory_space<vmem>>, %arg6: memref<128x128xf32, #tpu.memory_space<vmem>>, %arg7: memref<1x128xf32, #tpu.memory_space<vmem>>, %arg8: memref<8x128xf32, #tpu.memory_space<vmem>>) attributes {dimension_semantics = [#tpu.dimension_semantics<parallel>, #tpu.dimension_semantics<parallel>, #tpu.dimension_semantics<arbitrary>], iteration_bounds = array<i64: 2, 1, 1>, scalar_prefetch = 0 : i64, scratch_operands = 0 : i64, tpu.core_type = #tpu.core_type<tc>, window_params = [{transform_indices = @transform_0, window_bounds = array<i64: 8, 128>}, {transform_indices = @transform_1, window_bounds = array<i64: 128, 128>}, {transform_indices = @transform_2, window_bounds = array<i64: 1, 128>}, {transform_indices = @transform_3, window_bounds = array<i64: 128, 128>}, {transform_indices = @transform_4, window_bounds = array<i64: 1, 128>}, {transform_indices = @transform_5, window_bounds = array<i64: 8, 128>}]} {
    %c0_i32 = arith.constant 0 : i32
    %0 = arith.cmpi eq, %arg2, %c0_i32 : i32
    %1 = arith.extui %0 : i1 to i32
    %c0_i32_0 = arith.constant 0 : i32
    %2 = arith.cmpi ne, %1, %c0_i32_0 : i32
    scf.if %2 {
      %c0_16 = arith.constant 0 : index
      %c0_17 = arith.constant 0 : index
      %22 = vector.load %arg7[%c0_16, %c0_17] : memref<1x128xf32, #tpu.memory_space<vmem>>, vector<1x128xf32>
      %23 = vector.shape_cast %22 : vector<1x128xf32> to vector<1x128xf32>
      %24 = vector.broadcast %23 : vector<1x128xf32> to vector<8x128xf32>
      %c0_18 = arith.constant 0 : index
      %c0_19 = arith.constant 0 : index
      %25 = vector.load %arg8[%c0_18, %c0_19] : memref<8x128xf32, #tpu.memory_space<vmem>>, vector<8x128xf32>
      tpu.vector_store %arg8[%c0_18, %c0_19], %24 {strides = array<i32>} : memref<8x128xf32, #tpu.memory_space<vmem>>, vector<8x128xf32>,
    } else {
    }
    %c0 = arith.constant 0 : index
    %c0_1 = arith.constant 0 : index
    %3 = vector.load %arg3[%c0, %c0_1] : memref<8x128xf32, #tpu.memory_space<vmem>>, vector<8x128xf32>
    %c0_2 = arith.constant 0 : index
    %c0_3 = arith.constant 0 : index
    %4 = vector.load %arg4[%c0_2, %c0_3] : memref<128x128xf32, #tpu.memory_space<vmem>>, vector<128x128xf32>
    %cst = arith.constant dense<0.000000e+00> : vector<8x128xf32>
    %5 = tpu.matmul %3, %4, %cst {dimension_numbers = #tpu.dot_dimension_numbers<[1], [0], [0], [1], [0, 0, 1, 1], [], []>, precision = #tpu.contract_precision<fp32>} : vector<8x128xf32>, vector<128x128xf32>, vector<8x128xf32> -> vector<8x128xf32>
    %c0_4 = arith.constant 0 : index
    %c0_5 = arith.constant 0 : index
    %6 = vector.load %arg5[%c0_4, %c0_5] : memref<1x128xf32, #tpu.memory_space<vmem>>, vector<1x128xf32>
    %7 = vector.broadcast %6 : vector<1x128xf32> to vector<8x128xf32>
    %8 = arith.addf %5, %7 : vector<8x128xf32>
    %cst_6 = arith.constant 5.000000e-01 : f32
    %9 = vector.broadcast %cst_6 : f32 to vector<8x128xf32>
    %10 = arith.mulf %9, %8 : vector<8x128xf32>
    %cst_7 = arith.constant 0.707106769 : f32
    %11 = vector.broadcast %cst_7 : f32 to vector<8x128xf32>
    %12 = arith.mulf %8, %11 : vector<8x128xf32>
    %13 = math.erf %12 : vector<8x128xf32>
    %cst_8 = arith.constant 1.000000e+00 : f32
    %14 = vector.broadcast %cst_8 : f32 to vector<8x128xf32>
    %15 = arith.addf %14, %13 : vector<8x128xf32>
    %16 = arith.mulf %10, %15 : vector<8x128xf32>
    %c0_9 = arith.constant 0 : index
    %c0_10 = arith.constant 0 : index
    %17 = vector.load %arg8[%c0_9, %c0_10] : memref<8x128xf32, #tpu.memory_space<vmem>>, vector<8x128xf32>
    %c0_11 = arith.constant 0 : index
    %c0_12 = arith.constant 0 : index
    %18 = vector.load %arg6[%c0_11, %c0_12] : memref<128x128xf32, #tpu.memory_space<vmem>>, vector<128x128xf32>
    %cst_13 = arith.constant dense<0.000000e+00> : vector<8x128xf32>
    %19 = tpu.matmul %16, %18, %cst_13 {dimension_numbers = #tpu.dot_dimension_numbers<[1], [0], [0], [1], [0, 0, 1, 1], [], []>, precision = #tpu.contract_precision<fp32>} : vector<8x128xf32>, vector<128x128xf32>, vector<8x128xf32> -> vector<8x128xf32>
    %20 = arith.addf %17, %19 : vector<8x128xf32>
    %c0_14 = arith.constant 0 : index
    %c0_15 = arith.constant 0 : index
    %21 = vector.load %arg8[%c0_14, %c0_15] : memref<8x128xf32, #tpu.memory_space<vmem>>, vector<8x128xf32>
    tpu.vector_store %arg8[%c0_14, %c0_15], %20 {strides = array<i32>} : memref<8x128xf32, #tpu.memory_space<vmem>>, vector<8x128xf32>,
    return
  }
  func.func @transform_0(%arg0: i32, %arg1: i32, %arg2: i32) -> (i32, i32) {
    %c0_i32 = arith.constant 0 : i32
    %c0_i32_0 = arith.constant 0 : i32
    return %arg0, %c0_i32 : i32, i32
  }
  func.func @transform_1(%arg0: i32, %arg1: i32, %arg2: i32) -> (i32, i32) {
    %c0_i32 = arith.constant 0 : i32
    %c0_i32_0 = arith.constant 0 : i32
    return %c0_i32, %arg2 : i32, i32
  }
  func.func @transform_2(%arg0: i32, %arg1: i32, %arg2: i32) -> (i32, i32) {
    %c0_i32 = arith.constant 0 : i32
    %c0_i32_0 = arith.constant 0 : i32
    return %c0_i32, %arg2 : i32, i32
  }
  func.func @transform_3(%arg0: i32, %arg1: i32, %arg2: i32) -> (i32, i32) {
    %c0_i32 = arith.constant 0 : i32
    return %arg2, %arg1 : i32, i32
  }
  func.func @transform_4(%arg0: i32, %arg1: i32, %arg2: i32) -> (i32, i32) {
    %c0_i32 = arith.constant 0 : i32
    %c0_i32_0 = arith.constant 0 : i32
    return %c0_i32, %arg1 : i32, i32
  }
  func.func @transform_5(%arg0: i32, %arg1: i32, %arg2: i32) -> (i32, i32) {
    %c0_i32 = arith.constant 0 : i32
    return %arg0, %arg1 : i32, i32
  }
}

</mosaic_0001>

<bundles_post_ra>
// kernel: mlp_pallas.1
= control target key start
LH: loop header
LB: loop body
LE: loop exit
PB: predicated region body
PF: predicated region fallthrough
CT: control target
= control target key end

     0   :  { %s2823_s18 = smov 0   ;;  %s2825_s19 = smov 0   ;;  %s3444_s0 = inlined_call_operand.vmem [shape: f32[16,128], index: 0, kind: input, shape index: {}]   ;;  %s3445_s1 = inlined_call_operand.vmem [shape: f32[128,128], index: 1, kind: input, shape index: {}]   ;;  %s3446_s2 = inlined_call_operand.vmem [shape: f32[1,128], index: 2, kind: input, shape index: {}]   ;;  %s3447_s3 = inlined_call_operand.vmem [shape: f32[128,128], index: 3, kind: input, shape index: {}]   ;;  %s3448_s4 = inlined_call_operand.vmem [shape: f32[1,128], index: 4, kind: input, shape index: {}]   ;;  %s3449_s5 = inlined_call_operand.vmem [shape: f32[16,128], index: 5, kind: output, shape index: {}]  }
   0x1   :  { %s2827_s20 = smov 0  }
   0x2 LB: > { %s34_s21 = sadd.s32 1, %s2784_s19  ;;  %p1807_p0 = scmp.ge.s32.totalorder %s2788_s20, 1  ;;  %s2788_s20 = sphi %s2827_s20, %s15_s20   ;;  %s2784_s19 = sphi %s2825_s19, %s3467_s19   ;;  %s2780_s18 = sphi %s2823_s18, %s3466_s18  }
   0x3   : > { %p36_p1 = scmp.ge.s32.totalorder %s34_s21, 2  ;;  %p248_p2 = scmp.lt.s32.totalorder %s2788_s20, 3 }
   0x5   : > { %s3469_s21 = smov (%p36_p1, %s34_s21), 0  ;;  %p249_p3 = pnand %p1807_p0, %p248_p2 }
   0x6   : > { %v338_v0 = vld [vmem:[%s3445_s1] sm:$0xff] (!%p249_p3)  ;;  %v339_v1 = vld [vmem:[%s3445_s1 + $0x8] sm:$0xff] (!%p249_p3)  ;;  %v340_v2 = vld [vmem:[%s3445_s1 + $0x10] sm:$0xff] (!%p249_p3)  ;;  %v2790_v3 = vmov (!%p249_p3), 0.0|0.0   ;;  %vm2791_vm0 = vmmov (!%p249_p3), 0   ;;  %v2792_v8 = vmov (!%p249_p3), 0.0  }
   0x7   : > { %252 = sbr.rel (%p249_p3) target bundleno = 820 (0x334), region = 40  ;;  %2438 = vmatprep.subr.bf16.mxu0 (!%p249_p3), %v2790_v3  ;;  %v362_v4 = vand.u32 (!%p249_p3), 4294901760, %v338_v0  ;;  %v365_v5 = vand.u32 (!%p249_p3), 4294901760, %v339_v1  ;;  %v341_v6 = vld [vmem:[%s3445_s1 + $0x18] sm:$0xff] (!%p249_p3)  ;;  %v368_v7 = vand.u32 (!%p249_p3), 4294901760, %v340_v2  ;;  %2050 = vmatprep.mubr.msk.f32.mxu0 (!%p249_p3), %vm2791_vm0, %v2792_v8  ;;  %v342_v10 = vld [vmem:[%s3445_s1 + $0x20] sm:$0xff] (!%p249_p3) }
   0x8   : > { %v371_v9 = vand.u32 (!%p249_p3), 4294901760, %v341_v6  ;;  %v343_v11 = vld [vmem:[%s3445_s1 + $0x28] sm:$0xff] (!%p249_p3)  ;;  %2582 = vmatprep.subr.bf16.mxu1 (!%p249_p3), %v2790_v3  ;;  %2260 = vmatprep.mubr.msk.f32.mxu1 (!%p249_p3), %vm2791_vm0, %v2792_v8  ;;  %p295_p4 = scmp.lt.s32.totalorder (!%p249_p3), %s2780_s18, 1  ;;  %v374_v14 = vand.u32 (!%p249_p3), 4294901760, %v342_v10  ;;  %v344_v16 = vld [vmem:[%s3445_s1 + $0x30] sm:$0xff] (!%p249_p3)  ;;  %v345_v17 = vld [vmem:[%s3445_s1 + $0x38] sm:$0xff] (!%p249_p3) }
   0x9   : > { %v2867_v12 = vpack.c.bf16 (!%p249_p3), %v365_v5, %v362_v4  ;;  %v377_v15 = vand.u32 (!%p249_p3), 4294901760, %v343_v11  ;;  %v380_v19 = vand.u32 (!%p249_p3), 4294901760, %v344_v16  ;;  %v383_v20 = vand.u32 (!%p249_p3), 4294901760, %v345_v17  ;;  %v346_v21 = vld [vmem:[%s3445_s1 + $0x40] sm:$0xff] (!%p249_p3)  ;;  %v347_v22 = vld [vmem:[%s3445_s1 + $0x48] sm:$0xff] (!%p249_p3)  ;;  %v348_v29 = vld [vmem:[%s3445_s1 + $0x50] sm:$0xff] (!%p249_p3) }
   0xa   : > { %v2871_v13 = vpack.c.bf16 (!%p249_p3), %v371_v9, %v368_v7  ;;  %v2899_v24 = vsub.f32 (!%p249_p3), %v338_v0, %v362_v4  ;;  %v2901_v25 = vsub.f32 (!%p249_p3), %v339_v1, %v365_v5  ;;  %v386_v27 = vand.u32 (!%p249_p3), 4294901760, %v346_v21  ;;  %v349_v30 = vld [vmem:[%s3445_s1 + $0x58] sm:$0xff] (!%p249_p3)  ;;  %v350_v32 = vld [vmem:[%s3445_s1 + $0x60] sm:$0xff] (!%p249_p3)  ;;  %v351_v35 = vld [vmem:[%s3445_s1 + $0x68] sm:$0xff] (!%p249_p3) }
   0xb   : > { %2440 = vmatpush3.bf16.msra.mxu0 (!%p249_p3), %v2867_v12  ;;  %v2890_v18 = vpack.c.bf16 (!%p249_p3), %v377_v15, %v374_v14  ;;  %v2904_v26 = vpack.c.bf16 (!%p249_p3), %v383_v20, %v380_v19  ;;  %v389_v28 = vand.u32 (!%p249_p3), 4294901760, %v347_v22  ;;  %v2918_v33 = vsub.f32 (!%p249_p3), %v340_v2, %v368_v7  ;;  %v352_v36 = vld [vmem:[%s3445_s1 + $0x70] sm:$0xff] (!%p249_p3)  ;;  %v353_v37 = vld [vmem:[%s3445_s1 + $0x78] sm:$0xff] (!%p249_p3) }
   0xc   : > { %2441 = vmatprep.subr.bf16.mxu0 (!%p249_p3), %v2790_v3  ;;  %v392_v34 = vand.u32 (!%p249_p3), 4294901760, %v348_v29  ;;  %v395_v39 = vand.u32 (!%p249_p3), 4294901760, %v349_v30  ;;  %v455_v40 = vand.u32 (!%p249_p3), 4294901760, %v2899_v24  ;;  %v462_v41 = vand.u32 (!%p249_p3), 4294901760, %v2901_v25 }
   0xd   : > { %v2930_v38 = vpack.c.bf16 (!%p249_p3), %v389_v28, %v386_v27  ;;  %v2934_v42 = vsub.f32 (!%p249_p3), %v341_v6, %v371_v9  ;;  %v2936_v43 = vsub.f32 (!%p249_p3), %v342_v10, %v374_v14  ;;  %v2938_v44 = vsub.f32 (!%p249_p3), %v343_v11, %v377_v15 }
   0xe   : > { %s3471_s18 = smov (!%p295_p4, %s2780_s18), 1  ;;  %v398_v46 = vand.u32 4294901760, %v350_v32  ;;  %v401_v47 = vand.u32 4294901760, %v351_v35  ;;  %v404_v48 = vand.u32 4294901760, %v352_v36  ;;  %v407_v49 = vand.u32 4294901760, %v353_v37 }
   0xf   : > { %s1808_s13 = sshll.u32 %s3471_s18, 3  ;;  %2443 = vmatpush3.bf16.msra.mxu0 %v2871_v13  ;;  %v2944_v50 = vsub.f32 %v344_v16, %v380_v19  ;;  %v2946_v51 = vsub.f32 %v345_v17, %v383_v20  ;;  %v2948_v52 = vsub.f32 %v346_v21, %v386_v27  ;;  %v469_v53 = vand.u32 4294901760, %v2918_v33 }
  0x10   : > { %s298_s16 = scalar_lea.vmem %s3444_s0, %s1808_s13  ;;  %2444 = vmatprep.subr.bf16.mxu0 %v2790_v3  ;;  %v2952_v54 = vsub.f32 %v347_v22, %v389_v28  ;;  %v2954_v55 = vpack.c.bf16 %v395_v39, %v392_v34  ;;  %v456_v56 = vsub.f32 %v2899_v24, %v455_v40  ;;  %v463_v57 = vsub.f32 %v2901_v25, %v462_v41  ;;  %s324_s10 = scalar_lea.vmem %s3449_s5, %s1808_s13 }
  0x11   : > { %v337_v23 = vld [vmem:[%s298_s16] sm:$0xff]  ;;  %v2959_v58 = vsub.f32 %v348_v29, %v392_v34  ;;  %v2961_v59 = vsub.f32 %v349_v30, %v395_v39  ;;  %v2963_v60 = vsub.f32 %v350_v32, %v398_v46  ;;  %v2966_v62 = vpack.c.bf16 %v401_v47, %v398_v46 }
  0x12   : > { %v2913_v31 = vand.u32 4294901760, %v337_v23  ;;  %v2968_v63 = vsub.f32 %v351_v35, %v401_v47  ;;  %v2970_v0 = vpack.c.bf16 %v407_v49, %v404_v48  ;;  %v2972_v1 = vsub.f32 %v352_v36, %v404_v48 }
  0x13   : > { %2446 = vmatpush3.bf16.msra.mxu0 %v2890_v18  ;;  %v2974_v2 = vsub.f32 %v353_v37, %v407_v49  ;;  %v470_v4 = vsub.f32 %v2918_v33, %v469_v53  ;;  %v476_v5 = vand.u32 4294901760, %v2934_v42  ;;  %v483_v6 = vand.u32 4294901760, %v2936_v43 }
  0x14   : > { %2447 = vmatprep.subr.bf16.mxu0 %v2790_v3  ;;  %v2942_v45 = vsub.f32 %v337_v23, %v2913_v31  ;;  %v457_v7 = vand.u32 4294901760, %v456_v56  ;;  %v464_v9 = vand.u32 4294901760, %v463_v57  ;;  %v490_v10 = vand.u32 4294901760, %v2938_v44 }
  0x15   : > { %v497_v11 = vand.u32 4294901760, %v2944_v50  ;;  %v504_v15 = vand.u32 4294901760, %v2946_v51  ;;  %v511_v16 = vand.u32 4294901760, %v2948_v52  ;;  %v518_v17 = vand.u32 4294901760, %v2952_v54 }
  0x16   : > { %v444_v61 = vand.u32 4294901760, %v2942_v45  ;;  %v525_v19 = vand.u32 4294901760, %v2959_v58  ;;  %v532_v20 = vand.u32 4294901760, %v2961_v59  ;;  %v539_v21 = vand.u32 4294901760, %v2963_v60 }
  0x17   : > { %2449 = vmatpush3.bf16.msra.mxu0 %v2904_v26  ;;  %v546_v22 = vand.u32 4294901760, %v2968_v63  ;;  %v553_v23 = vand.u32 4294901760, %v2972_v1  ;;  %v560_v27 = vand.u32 4294901760, %v2974_v2  ;;  %v2995_v28 = vpack.c.bf16 %v462_v41, %v455_v40 }
  0x18   : > { %2450 = vmatprep.subr.bf16.mxu0 %v2790_v3  ;;  %v445_v14 = vsub.f32 %v2942_v45, %v444_v61  ;;  %v2997_v29 = vpack.c.bf16 %v476_v5, %v469_v53  ;;  %v477_v30 = vsub.f32 %v2934_v42, %v476_v5  ;;  %v3001_v32 = vpack.c.bf16 %v490_v10, %v483_v6 }
  0x19   : > { %v3003_v34 = vpack.c.bf16 %v504_v15, %v497_v11  ;;  %v3005_v35 = vpack.c.bf16 %v518_v17, %v511_v16  ;;  %v3008_v36 = vpack.c.bf16 %v532_v20, %v525_v19  ;;  %v3010_v37 = vpack.c.bf16 %v546_v22, %v539_v21 }
  0x1a   : > { %v3012_v39 = vpack.c.bf16 %v560_v27, %v553_v23  ;;  %v446_v40 = vand.u32 4294901760, %v445_v14  ;;  %v471_v41 = vand.u32 4294901760, %v470_v4  ;;  %v2463_v46 = vpack.c.bf16 %v464_v9, %v457_v7 }
  0x1b   : > { %2452 = vmatpush3.bf16.msra.mxu0 %v2930_v38  ;;  %v478_v47 = vand.u32 4294901760, %v477_v30  ;;  %v484_v48 = vsub.f32 %v2936_v43, %v483_v6  ;;  %v491_v49 = vsub.f32 %v2938_v44, %v490_v10  ;;  %v498_v53 = vsub.f32 %v2944_v50, %v497_v11 }
  0x1c   : > { %2453 = vmatprep.subr.bf16.mxu0 %v2790_v3  ;;  %v505_v14 = vsub.f32 %v2946_v51, %v504_v15  ;;  %v512_v4 = vsub.f32 %v2948_v52, %v511_v16  ;;  %v519_v10 = vsub.f32 %v2952_v54, %v518_v17  ;;  %v526_v15 = vsub.f32 %v2959_v58, %v525_v19 }
  0x1d   : > { %v2466_v56 = vpack.c.bf16 %v478_v47, %v471_v41  ;;  %v485_v57 = vand.u32 4294901760, %v484_v48  ;;  %v492_v5 = vand.u32 4294901760, %v491_v49  ;;  %v499_v7 = vand.u32 4294901760, %v498_v53 }
  0x1e   : > { %v506_v9 = vand.u32 4294901760, %v505_v14  ;;  %v513_v11 = vand.u32 4294901760, %v512_v4  ;;  %v533_v41 = vsub.f32 %v2961_v59, %v532_v20  ;;  %v540_v16 = vsub.f32 %v2963_v60, %v539_v21 }
  0x1f   : > { %2455 = vmatpush3.bf16.msra.mxu0 %v2954_v55  ;;  %v2469_v6 = vpack.c.bf16 %v492_v5, %v485_v57  ;;  %v527_v47 = vand.u32 4294901760, %v526_v15  ;;  %v547_v17 = vsub.f32 %v2968_v63, %v546_v22  ;;  %v554_v19 = vsub.f32 %v2972_v1, %v553_v23  ;;  %v1008_v23 = vld [vmem:[%s3447_s3] sm:$0xff] }
  0x20   : > { %2456 = vmatprep.subr.bf16.mxu0 %v2790_v3  ;;  %v2472_v30 = vpack.c.bf16 %v506_v9, %v499_v7  ;;  %v534_v48 = vand.u32 4294901760, %v533_v41  ;;  %v541_v49 = vand.u32 4294901760, %v540_v16  ;;  %v561_v20 = vsub.f32 %v2974_v2, %v560_v27  ;;  %v1009_v27 = vld [vmem:[%s3447_s3 + $0x8] sm:$0xff] }
  0x21   : > { %v555_v57 = vand.u32 4294901760, %v554_v19  ;;  %v2487_v14 = vpack.c.bf16 %v2901_v25, %v2899_v24  ;;  %v2490_v4 = vpack.c.bf16 %v2934_v42, %v2918_v33  ;;  %v1025_v24 = vand.u32 4294901760, %v1008_v23 }
  0x22   : > { %v2478_v53 = vpack.c.bf16 %v534_v48, %v527_v47  ;;  %v562_v5 = vand.u32 4294901760, %v561_v20  ;;  %v1028_v25 = vand.u32 4294901760, %v1009_v27  ;;  %v2496_v33 = vpack.c.bf16 %v2946_v51, %v2944_v50  ;;  %v1023_v47 = vld [vmem:[%s3447_s3 + $0x78] sm:$0xff] }
  0x23   : > { %2458 = vmatpush3.bf16.msra.mxu0 %v2966_v62  ;;  %v3054_v7 = vsub.f32 %v1008_v23, %v1025_v24  ;;  %v2499_v42 = vpack.c.bf16 %v2952_v54, %v2948_v52  ;;  %v2508_v50 = vpack.c.bf16 %v2974_v2, %v2972_v1 }
  0x24   : > { %2459 = vmatprep.subr.bf16.mxu0 %v2790_v3  ;;  %v2484_v22 = vpack.c.bf16 %v562_v5, %v555_v57  ;;  %v3056_v9 = vsub.f32 %v1009_v27, %v1028_v25  ;;  %v1070_v5 = vand.u32 4294901760, %v1023_v47 }
  0x27   : > { %2461 = vmatpush3.bf16.msra.mxu0 %v2970_v0 }
  0x28   : > { %2462 = vmatprep.subr.bf16.mxu0 %v2790_v3 }
  0x2a   : > { %2051 = vmatmul.mubr.f32.vlgmr.msra.gmra.mrb[0].mxu0 %v446_v40  ;;  %v520_v40 = vand.u32 4294901760, %v519_v10  ;;  %v2493_v10 = vpack.c.bf16 %v2938_v44, %v2936_v43  ;;  %v2502_v43 = vpack.c.bf16 %v2961_v59, %v2959_v58  ;;  %v2505_v44 = vpack.c.bf16 %v2968_v63, %v2963_v60  ;;  %v1015_v58 = vld [vmem:[%s3447_s3 + $0x38] sm:$0xff]  ;;  %v1017_v63 = vld [vmem:[%s3447_s3 + $0x48] sm:$0xff] }
  0x2b   : > { %2464 = vmatpush3.bf16.msra.mxu0 %v2463_v46  ;;  %2085 = vmatprep.mubr.msk.f32.mxu0 %vm2791_vm0, %v2792_v8  ;;  %v1046_v60 = vand.u32 4294901760, %v1015_v58  ;;  %v1052_v1 = vand.u32 4294901760, %v1017_v63 }
  0x2c   : > { %2465 = vmatprep.subr.bf16.mxu0 %v2790_v3  ;;  %v2475_v46 = vpack.c.bf16 %v520_v40, %v513_v11 }
  0x2f   : > { %2467 = vmatpush3.bf16.msra.mxu0 %v2466_v56  ;;  %v548_v56 = vand.u32 4294901760, %v547_v17  ;;  %v3212_v17 = vsub.f32 %v1015_v58, %v1046_v60 }
  0x30   : > { %2468 = vmatprep.subr.bf16.mxu0 %v2790_v3 }
  0x31   : > { %v2481_v21 = vpack.c.bf16 %v548_v56, %v541_v49 }
  0x33   : > { %2470 = vmatpush3.bf16.msra.mxu0 %v2469_v6  ;;  %v3052_v6 = vpack.c.bf16 %v1028_v25, %v1025_v24 }
  0x34   : > { %2471 = vmatprep.subr.bf16.mxu0 %v2790_v3 }
  0x35   : > { %2584 = vmatpush3.bf16.msra.mxu1 %v3052_v6 }
  0x36   : > { %2585 = vmatprep.subr.bf16.mxu1 %v2790_v3 }
  0x37   : > { %2473 = vmatpush3.bf16.msra.mxu0 %v2472_v30 }
  0x38   : > { %2474 = vmatprep.subr.bf16.mxu0 %v2790_v3 }
  0x3b   : > { %2476 = vmatpush3.bf16.msra.mxu0 %v2475_v46  ;;  %v1022_v46 = vld [vmem:[%s3447_s3 + $0x70] sm:$0xff] }
  0x3c   : > { %2477 = vmatprep.subr.bf16.mxu0 %v2790_v3  ;;  %v1067_v57 = vand.u32 4294901760, %v1022_v46 }
  0x3e   : > { %v3229_v23 = vpack.c.bf16 %v1070_v5, %v1067_v57  ;;  %v3231_v27 = vsub.f32 %v1022_v46, %v1067_v57 }
  0x3f   : > { %2479 = vmatpush3.bf16.msra.mxu0 %v2478_v53  ;;  %v3216_v53 = vsub.f32 %v1017_v63, %v1052_v1 }
  0x40   : > { %2480 = vmatprep.subr.bf16.mxu0 %v2790_v3 }
  0x43   : > { %2482 = vmatpush3.bf16.msra.mxu0 %v2481_v21 }
  0x44   : > { %2483 = vmatprep.subr.bf16.mxu0 %v2790_v3 }
  0x47   : > { %2485 = vmatpush3.bf16.msra.mxu0 %v2484_v22  ;;  %v1118_v22 = vand.u32 4294901760, %v3054_v7 }
  0x48   : > { %2486 = vmatprep.subr.bf16.mxu0 %v2790_v3 }
  0x49   : > { %v1119_v24 = vsub.f32 %v3054_v7, %v1118_v22 }
  0x4a   : > { %2086 = vmatmul.mubr.f32.vlgmr.msra.gmra.mrb[0].mxu0 %v2913_v31 }
  0x4b   : > { %2488 = vmatpush3.bf16.msra.mxu0 %v2487_v14  ;;  %2120 = vmatprep.mubr.msk.f32.mxu0 %vm2791_vm0, %v2792_v8  ;;  %v1125_v14 = vand.u32 4294901760, %v3056_v9 }
  0x4c   : > { %2489 = vmatprep.subr.bf16.mxu0 %v2790_v3 }
  0x4d   : > { %v1126_v25 = vsub.f32 %v3056_v9, %v1125_v14 }
  0x4f   : > { %2491 = vmatpush3.bf16.msra.mxu0 %v2490_v4  ;;  %v3233_v4 = vsub.f32 %v1023_v47, %v1070_v5 }
  0x50   : > { %2492 = vmatprep.subr.bf16.mxu0 %v2790_v3 }
  0x53   : > { %2494 = vmatpush3.bf16.msra.mxu0 %v2493_v10 }
  0x54   : > { %2495 = vmatprep.subr.bf16.mxu0 %v2790_v3 }
  0x57   : > { %2497 = vmatpush3.bf16.msra.mxu0 %v2496_v33 }
  0x58   : > { %2498 = vmatprep.subr.bf16.mxu0 %v2790_v3 }
  0x5b   : > { %2500 = vmatpush3.bf16.msra.mxu0 %v2499_v42  ;;  %v1120_v42 = vand.u32 4294901760, %v1119_v24 }
  0x5c   : > { %2501 = vmatprep.subr.bf16.mxu0 %v2790_v3 }
  0x5f   : > { %2503 = vmatpush3.bf16.msra.mxu0 %v2502_v43  ;;  %v1127_v43 = vand.u32 4294901760, %v1126_v25 }
  0x60   : > { %2504 = vmatprep.subr.bf16.mxu0 %v2790_v3 }
  0x63   : > { %2506 = vmatpush3.bf16.msra.mxu0 %v2505_v44 }
  0x64   : > { %2507 = vmatprep.subr.bf16.mxu0 %v2790_v3 }
  0x67   : > { %2509 = vmatpush3.bf16.msra.mxu0 %v2508_v50 }
  0x68   : > { %2510 = vmatprep.subr.bf16.mxu0 %v2790_v3 }
  0x6a   : > { %2121 = vmatmul.mubr.f32.vlgmr.msra.gmra.mrb[0].mxu0 %v2942_v45  ;;  %v1012_v45 = vld [vmem:[%s3447_s3 + $0x20] sm:$0xff] }
  0x6b   : > { %2512 = vmatpush3.bf16.msra.mxu0 %v2867_v12  ;;  %2155 = vmatprep.mubr.msk.f32.mxu0 %vm2791_vm0, %v2792_v8  ;;  %v1037_v51 = vand.u32 4294901760, %v1012_v45 }
  0x6c   : > { %2513 = vmatprep.subr.bf16.mxu0 %v2790_v3 }
  0x6d   : > { %v3199_v41 = vsub.f32 %v1012_v45, %v1037_v51 }
  0x6f   : > { %2515 = vmatpush3.bf16.msra.mxu0 %v2871_v13 }
  0x70   : > { %2516 = vmatprep.subr.bf16.mxu0 %v2790_v3 }
  0x73   : > { %2518 = vmatpush3.bf16.msra.mxu0 %v2890_v18 }
  0x74   : > { %2519 = vmatprep.subr.bf16.mxu0 %v2790_v3 }
  0x77   : > { %2521 = vmatpush3.bf16.msra.mxu0 %v2904_v26 }
  0x78   : > { %2522 = vmatprep.subr.bf16.mxu0 %v2790_v3 }
  0x7b   : > { %2524 = vmatpush3.bf16.msra.mxu0 %v2930_v38 }
  0x7c   : > { %2525 = vmatprep.subr.bf16.mxu0 %v2790_v3 }
  0x7f   : > { %2527 = vmatpush3.bf16.msra.mxu0 %v2954_v55 }
  0x80   : > { %2528 = vmatprep.subr.bf16.mxu0 %v2790_v3 }
  0x83   : > { %2530 = vmatpush3.bf16.msra.mxu0 %v2966_v62 }
  0x84   : > { %2531 = vmatprep.subr.bf16.mxu0 %v2790_v3 }
  0x87   : > { %2533 = vmatpush3.bf16.msra.mxu0 %v2970_v0 }
  0x88   : > { %2534 = vmatprep.subr.bf16.mxu0 %v2790_v3 }
  0x8a   : > { %2156 = vmatmul.mubr.f32.vlgmr.msra.gmra.mrb[0].mxu0 %v444_v61 }
  0x8b   : > { %2536 = vmatpush3.bf16.msra.mxu0 %v2995_v28  ;;  %2190 = vmatprep.mubr.msk.f32.mxu0 %vm2791_vm0, %v2792_v8  ;;  %v1018_v28 = vld [vmem:[%s3447_s3 + $0x50] sm:$0xff] }
  0x8c   : > { %2537 = vmatprep.subr.bf16.mxu0 %v2790_v3 }
  0x8f   : > { %2539 = vmatpush3.bf16.msra.mxu0 %v2997_v29  ;;  %v1019_v29 = vld [vmem:[%s3447_s3 + $0x58] sm:$0xff] }
  0x90   : > { %2540 = vmatprep.subr.bf16.mxu0 %v2790_v3 }
  0x93   : > { %2542 = vmatpush3.bf16.msra.mxu0 %v3001_v32  ;;  %v1055_v32 = vand.u32 4294901760, %v1018_v28 }
  0x94   : > { %2543 = vmatprep.subr.bf16.mxu0 %v2790_v3 }
  0x95   : > { %v3219_v56 = vsub.f32 %v1018_v28, %v1055_v32 }
  0x97   : > { %2545 = vmatpush3.bf16.msra.mxu0 %v3003_v34  ;;  %v1058_v34 = vand.u32 4294901760, %v1019_v29  ;;  %v3455_v46 = vand.u32 4294901760, %v3219_v56 }
  0x98   : > { %2546 = vmatprep.subr.bf16.mxu0 %v2790_v3 }
  0x99   : > { %v3221_v19 = vsub.f32 %v1019_v29, %v1058_v34  ;;  %v1189_v5 = vsub.f32 %v3219_v56, %v3455_v46 }
  0x9b   : > { %2548 = vmatpush3.bf16.msra.mxu0 %v3005_v35  ;;  %v3183_v35 = vpack.c.bf16 %v1058_v34, %v1055_v32  ;;  %v3456_v32 = vand.u32 4294901760, %v3216_v53  ;;  %v3454_v47 = vand.u32 4294901760, %v3221_v19  ;;  %v1190_v25 = vand.u32 4294901760, %v1189_v5 }
  0x9c   : > { %2549 = vmatprep.subr.bf16.mxu0 %v2790_v3 }
  0x9d   : > { %v1196_v24 = vsub.f32 %v3221_v19, %v3454_v47 }
  0x9f   : > { %2551 = vmatpush3.bf16.msra.mxu0 %v3008_v36  ;;  %v1020_v36 = vld [vmem:[%s3447_s3 + $0x60] sm:$0xff] }
  0xa0   : > { %2552 = vmatprep.subr.bf16.mxu0 %v2790_v3 }
  0xa3   : > { %2554 = vmatpush3.bf16.msra.mxu0 %v3010_v37  ;;  %v1021_v37 = vld [vmem:[%s3447_s3 + $0x68] sm:$0xff] }
  0xa4   : > { %2555 = vmatprep.subr.bf16.mxu0 %v2790_v3  ;;  %v1064_v11 = vand.u32 4294901760, %v1021_v37 }
  0xa6   : > { %v3225_v21 = vsub.f32 %v1021_v37, %v1064_v11  ;;  %v1182_v37 = vsub.f32 %v3216_v53, %v3456_v32 }
  0xa7   : > { %2557 = vmatpush3.bf16.msra.mxu0 %v3012_v39  ;;  %v1061_v39 = vand.u32 4294901760, %v1020_v36 }
  0xa8   : > { %2558 = vmatprep.subr.bf16.mxu0 %v2790_v3 }
  0xa9   : > { %v3193_v30 = vpack.c.bf16 %v1064_v11, %v1061_v39  ;;  %v3223_v20 = vsub.f32 %v1020_v36, %v1061_v39  ;;  %v1183_v11 = vand.u32 4294901760, %v1182_v37 }
  0xaa   : > { %2191 = vmatmul.mubr.f32.vlgmr.msra.gmra.mrb[0].mxu0 %v2913_v31 }
  0xab   : > { %2560 = vmatpush3.bf16.msra.mxu0 %v2867_v12  ;;  %2225 = vmatprep.mubr.msk.f32.mxu0 %vm2791_vm0, %v2792_v8  ;;  %v1010_v12 = vld [vmem:[%s3447_s3 + $0x10] sm:$0xff] }
  0xac   : > { %2561 = vmatprep.subr.bf16.mxu0 %v2790_v3 }
  0xaf   : > { %2563 = vmatpush3.bf16.msra.mxu0 %v2871_v13  ;;  %v1011_v13 = vld [vmem:[%s3447_s3 + $0x18] sm:$0xff] }
  0xb0   : > { %2564 = vmatprep.subr.bf16.mxu0 %v2790_v3 }
  0xb3   : > { %2566 = vmatpush3.bf16.msra.mxu0 %v2890_v18  ;;  %v1031_v18 = vand.u32 4294901760, %v1010_v12 }
  0xb4   : > { %2567 = vmatprep.subr.bf16.mxu0 %v2790_v3 }
  0xb5   : > { %v3195_v40 = vsub.f32 %v1010_v12, %v1031_v18  ;;  %v1146_v12 = vand.u32 4294901760, %v3199_v41 }
  0xb7   : > { %2569 = vmatpush3.bf16.msra.mxu0 %v2904_v26  ;;  %v1034_v26 = vand.u32 4294901760, %v1011_v13  ;;  %v1132_v10 = vand.u32 4294901760, %v3195_v40 }
  0xb8   : > { %2570 = vmatprep.subr.bf16.mxu0 %v2790_v3 }
  0xb9   : > { %v3197_v15 = vsub.f32 %v1011_v13, %v1034_v26  ;;  %v1133_v44 = vsub.f32 %v3195_v40, %v1132_v10 }
  0xbb   : > { %2572 = vmatpush3.bf16.msra.mxu0 %v2930_v38  ;;  %v3143_v38 = vpack.c.bf16 %v1034_v26, %v1031_v18  ;;  %v1139_v33 = vand.u32 4294901760, %v3197_v15  ;;  %v3253_v18 = vpack.c.bf16 %v1127_v43, %v1120_v42  ;;  %v1134_v26 = vand.u32 4294901760, %v1133_v44 }
  0xbc   : > { %2573 = vmatprep.subr.bf16.mxu0 %v2790_v3  ;;  %v1197_v42 = vand.u32 4294901760, %v1196_v24  ;;  %v3453_v43 = vand.u32 4294901760, %v3223_v20  ;;  %v3452_v44 = vand.u32 4294901760, %v3225_v21 }
  0xbd   : > { %2587 = vmatpush3.bf16.msra.mxu1 %v3143_v38  ;;  %v1140_v50 = vsub.f32 %v3197_v15, %v1139_v33 }
  0xbe   : > { %2588 = vmatprep.subr.bf16.mxu1 %v2790_v3 }
  0xbf   : > { %2575 = vmatpush3.bf16.msra.mxu0 %v2954_v55  ;;  %v1014_v55 = vld [vmem:[%s3447_s3 + $0x30] sm:$0xff]  ;;  %v1141_v45 = vand.u32 4294901760, %v1140_v50  ;;  %v2622_v50 = vpack.c.bf16 %v1197_v42, %v1190_v25  ;;  %v2646_v42 = vpack.c.bf16 %v3221_v19, %v3219_v56 }
  0xc0   : > { %2576 = vmatprep.subr.bf16.mxu0 %v2790_v3  ;;  %v1043_v59 = vand.u32 4294901760, %v1014_v55 }
  0xc2   : > { %v3163_v61 = vpack.c.bf16 %v1046_v60, %v1043_v59  ;;  %v3210_v48 = vsub.f32 %v1014_v55, %v1043_v59  ;;  %v1167_v60 = vand.u32 4294901760, %v3212_v17 }
  0xc3   : > { %2578 = vmatpush3.bf16.msra.mxu0 %v2966_v62  ;;  %v1016_v62 = vld [vmem:[%s3447_s3 + $0x40] sm:$0xff] }
  0xc4   : > { %2579 = vmatprep.subr.bf16.mxu0 %v2790_v3  ;;  %v1160_v59 = vand.u32 4294901760, %v3210_v48  ;;  %v2640_v24 = vpack.c.bf16 %v3212_v17, %v3210_v48 }
  0xc6   : > { %v1161_v63 = vsub.f32 %v3210_v48, %v1160_v59  ;;  %v3462_v48 = vand.u32 4294901760, %v3223_v20 }
  0xc7   : > { %2581 = vmatpush3.bf16.msra.mxu0 %v2970_v0  ;;  %v1049_v0 = vand.u32 4294901760, %v1016_v62 }
  0xc9   : > { %v3173_v2 = vpack.c.bf16 %v1052_v1, %v1049_v0  ;;  %v3214_v49 = vsub.f32 %v1016_v62, %v1049_v0  ;;  %v1168_v0 = vsub.f32 %v3212_v17, %v1167_v60  ;;  %v1162_v1 = vand.u32 4294901760, %v1161_v63 }
  0xca   : > { %2226 = vmatmul.mubr.f32.vlgmr.msra.gmra.mrb[0].mxu0 %v2913_v31  ;;  %v1013_v31 = vld [vmem:[%s3447_s3 + $0x28] sm:$0xff]  ;;  %v3463_v17 = vand.u32 4294901760, %v3225_v21 }
  0xcb   : > { %v1040_v52 = vand.u32 4294901760, %v1013_v31  ;;  %v1169_v28 = vand.u32 4294901760, %v1168_v0  ;;  %v3457_v29 = vand.u32 4294901760, %v3214_v49  ;;  %v2643_v25 = vpack.c.bf16 %v3216_v53, %v3214_v49 }
  0xcd   : > { %v3153_v54 = vpack.c.bf16 %v1040_v52, %v1037_v51  ;;  %v3201_v16 = vsub.f32 %v1013_v31, %v1040_v52  ;;  %v1147_v31 = vsub.f32 %v3199_v41, %v1146_v12  ;;  %v3261_v52 = vpack.c.bf16 %v1141_v45, %v1134_v26 }
  0xce   : > { %v2616_v34 = vpack.c.bf16 %v1169_v28, %v1162_v1  ;;  %v1175_v36 = vsub.f32 %v3214_v49, %v3457_v29  ;;  %v1203_v26 = vsub.f32 %v3223_v20, %v3453_v43  ;;  %v1210_v45 = vsub.f32 %v3225_v21, %v3452_v44 }
  0xcf   : > { %2590 = vmatpush3.bf16.msra.mxu1 %v3153_v54  ;;  %v1153_v13 = vand.u32 4294901760, %v3201_v16  ;;  %v1148_v55 = vand.u32 4294901760, %v1147_v31  ;;  %v2637_v5 = vpack.c.bf16 %v3201_v16, %v3199_v41  ;;  %v3460_v41 = vand.u32 4294901760, %v3219_v56 }
  0xd0   : > { %2591 = vmatprep.subr.bf16.mxu1 %v2790_v3  ;;  %v1176_v39 = vand.u32 4294901760, %v1175_v36  ;;  %v1204_v31 = vand.u32 4294901760, %v1203_v26  ;;  %v2649_v26 = vpack.c.bf16 %v3225_v21, %v3223_v20 }
  0xd1   : > { %v1154_v51 = vsub.f32 %v3201_v16, %v1153_v13  ;;  %v3461_v16 = vand.u32 4294901760, %v3221_v19 }
  0xd2   : > { %v2619_v57 = vpack.c.bf16 %v1183_v11, %v1176_v39  ;;  %v2631_v39 = vpack.c.bf16 %v3056_v9, %v3054_v7  ;;  %v2634_v11 = vpack.c.bf16 %v3197_v15, %v3195_v40  ;;  %v2685_v7 = vpack.c.bf16 %v1153_v13, %v1146_v12 }
  0xd3   : > { %2593 = vmatpush3.bf16.msra.mxu1 %v3163_v61  ;;  %v1155_v58 = vand.u32 4294901760, %v1154_v51  ;;  %v1211_v51 = vand.u32 4294901760, %v1210_v45  ;;  %v2652_v45 = vpack.c.bf16 %v3233_v4, %v3231_v27  ;;  %v2688_v9 = vpack.c.bf16 %v1167_v60, %v1160_v59 }
  0xd4   : > { %2594 = vmatprep.subr.bf16.mxu1 %v2790_v3  ;;  %v3458_v40 = vand.u32 4294901760, %v3214_v49  ;;  %v3459_v15 = vand.u32 4294901760, %v3216_v53  ;;  %v3464_v49 = vand.u32 4294901760, %v3231_v27  ;;  %v3465_v53 = vand.u32 4294901760, %v3233_v4 }
  0xd5   : > { %v2613_v62 = vpack.c.bf16 %v1155_v58, %v1148_v55  ;;  %v3451_v55 = vand.u32 4294901760, %v3231_v27  ;;  %v3450_v58 = vand.u32 4294901760, %v3233_v4  ;;  %v2625_v63 = vpack.c.bf16 %v1211_v51, %v1204_v31  ;;  %v1811_v31 = vld [vmem:[%s3446_s2] ss:$0 sm:$0xff] }
  0xd7   : > { %2596 = vmatpush3.bf16.msra.mxu1 %v3173_v2  ;;  %v1217_v0 = vsub.f32 %v3231_v27, %v3451_v55  ;;  %v1224_v1 = vsub.f32 %v3233_v4, %v3450_v58 }
  0xd8   : > { %2597 = vmatprep.subr.bf16.mxu1 %v2790_v3 }
  0xd9   : > { %v1218_v28 = vand.u32 4294901760, %v1217_v0  ;;  %v1225_v36 = vand.u32 4294901760, %v1224_v1 }
  0xdb   : > { %2599 = vmatpush3.bf16.msra.mxu1 %v3183_v35  ;;  %v2628_v37 = vpack.c.bf16 %v1225_v36, %v1218_v28 }
  0xdc   : > { %2600 = vmatprep.subr.bf16.mxu1 %v2790_v3 }
  0xdf   : > { %2602 = vmatpush3.bf16.msra.mxu1 %v3193_v30 }
  0xe0   : > { %2603 = vmatprep.subr.bf16.mxu1 %v2790_v3 }
  0xe3   : > { %2605 = vmatpush3.bf16.msra.mxu1 %v3229_v23 }
  0xe4   : > { %2606 = vmatprep.subr.bf16.mxu1 %v2790_v3 }
 0x19d   : > { %v998_v51 = vpop.f32.mrb[0].mxu0 }
 0x19e   : > { %v2726_v0 = vadd.f32 %v1811_v31, %v998_v51  ;;  %v2227_v1 = vpop.f32.mrb[1].mxu0 }
 0x1a0   : > { %v1003_v28 = vmul.f32 0.70710677, %v2726_v0  ;;  %v1002_v58 = vmul.f32 0.5, %v2726_v0 }
 0x1a2   : > { %2764 = verf.f32 %v1003_v28 }
 0x1ac   : > { %v2765_v36 = vpop.eup %2764 }
 0x1ad   : > { %v1005_v55 = vadd.f32 1.0, %v2765_v36 }
 0x1af   : > { %v1006_v44 = vmul.f32 %v1005_v55, %v1002_v58 }
 0x1b1   : > { %v3322_v43 = vand.u32 4294901760, %v1006_v44 }
 0x1b3   : > { %v1106_v47 = vsub.f32 %v1006_v44, %v3322_v43 }
 0x1b5   : > { %v1107_v46 = vand.u32 4294901760, %v1106_v47 }
 0x1b7   : > { %v1108_v32 = vsub.f32 %v1106_v47, %v1107_v46 }
 0x1b9   : > { %v1109_v29 = vand.u32 4294901760, %v1108_v32 }
 0x1bb   : > { %2261 = vmatmul.mubr.f32.vlgmr.msra.gmra.mrb[0].mxu1 %v1109_v29 }
 0x1bc   : > { %2608 = vmatpush3.bf16.msra.mxu1 %v3253_v18  ;;  %2295 = vmatprep.mubr.msk.f32.mxu1 %vm2791_vm0, %v2792_v8  ;;  %v2679_v18 = vpack.c.bf16 %v1125_v14, %v1118_v22  ;;  %v2691_v22 = vpack.c.bf16 %v3459_v15, %v3458_v40  ;;  %v2694_v14 = vpack.c.bf16 %v3461_v16, %v3460_v41 }
 0x1bd   : > { %2609 = vmatprep.subr.bf16.mxu1 %v2790_v3 }
 0x1c0   : > { %2611 = vmatpush3.bf16.msra.mxu1 %v3261_v52  ;;  %v2682_v52 = vpack.c.bf16 %v1139_v33, %v1132_v10  ;;  %v2697_v10 = vpack.c.bf16 %v3463_v17, %v3462_v48  ;;  %v2700_v33 = vpack.c.bf16 %v3465_v53, %v3464_v49 }
 0x1c1   : > { %2612 = vmatprep.subr.bf16.mxu1 %v2790_v3 }
 0x1c4   : > { %2614 = vmatpush3.bf16.msra.mxu1 %v2613_v62 }
 0x1c5   : > { %2615 = vmatprep.subr.bf16.mxu1 %v2790_v3 }
 0x1c8   : > { %2617 = vmatpush3.bf16.msra.mxu1 %v2616_v34 }
 0x1c9   : > { %2618 = vmatprep.subr.bf16.mxu1 %v2790_v3 }
 0x1cc   : > { %2620 = vmatpush3.bf16.msra.mxu1 %v2619_v57 }
 0x1cd   : > { %2621 = vmatprep.subr.bf16.mxu1 %v2790_v3 }
 0x1d0   : > { %2623 = vmatpush3.bf16.msra.mxu1 %v2622_v50 }
 0x1d1   : > { %2624 = vmatprep.subr.bf16.mxu1 %v2790_v3 }
 0x1d4   : > { %2626 = vmatpush3.bf16.msra.mxu1 %v2625_v63 }
 0x1d5   : > { %2627 = vmatprep.subr.bf16.mxu1 %v2790_v3 }
 0x1d8   : > { %2629 = vmatpush3.bf16.msra.mxu1 %v2628_v37 }
 0x1d9   : > { %2630 = vmatprep.subr.bf16.mxu1 %v2790_v3 }
 0x1db   : > { %2296 = vmatmul.mubr.f32.vlgmr.msra.gmra.mrb[2].mxu1 %v3322_v43 }
 0x1dc   : > { %2632 = vmatpush3.bf16.msra.mxu1 %v2631_v39  ;;  %2330 = vmatprep.mubr.msk.f32.mxu1 %vm2791_vm0, %v2792_v8 }
 0x1dd   : > { %2633 = vmatprep.subr.bf16.mxu1 %v2790_v3 }
 0x1e0   : > { %2635 = vmatpush3.bf16.msra.mxu1 %v2634_v11 }
 0x1e1   : > { %2636 = vmatprep.subr.bf16.mxu1 %v2790_v3 }
 0x1e4   : > { %2638 = vmatpush3.bf16.msra.mxu1 %v2637_v5 }
 0x1e5   : > { %2639 = vmatprep.subr.bf16.mxu1 %v2790_v3 }
 0x1e8   : > { %2641 = vmatpush3.bf16.msra.mxu1 %v2640_v24 }
 0x1e9   : > { %2642 = vmatprep.subr.bf16.mxu1 %v2790_v3 }
 0x1ec   : > { %2644 = vmatpush3.bf16.msra.mxu1 %v2643_v25 }
 0x1ed   : > { %2645 = vmatprep.subr.bf16.mxu1 %v2790_v3 }
 0x1f0   : > { %2647 = vmatpush3.bf16.msra.mxu1 %v2646_v42 }
 0x1f1   : > { %2648 = vmatprep.subr.bf16.mxu1 %v2790_v3 }
 0x1f4   : > { %2650 = vmatpush3.bf16.msra.mxu1 %v2649_v26 }
 0x1f5   : > { %2651 = vmatprep.subr.bf16.mxu1 %v2790_v3 }
 0x1f8   : > { %2653 = vmatpush3.bf16.msra.mxu1 %v2652_v45 }
 0x1f9   : > { %2654 = vmatprep.subr.bf16.mxu1 %v2790_v3 }
 0x1fb   : > { %2331 = vmatmul.mubr.f32.vlgmr.msra.gmra.mrb[4].mxu1 %v1106_v47 }
 0x1fc   : > { %2656 = vmatpush3.bf16.msra.mxu1 %v3052_v6  ;;  %2365 = vmatprep.mubr.msk.f32.mxu1 %vm2791_vm0, %v2792_v8 }
 0x1fd   : > { %2657 = vmatprep.subr.bf16.mxu1 %v2790_v3 }
 0x200   : > { %2659 = vmatpush3.bf16.msra.mxu1 %v3143_v38 }
 0x201   : > { %2660 = vmatprep.subr.bf16.mxu1 %v2790_v3 }
 0x204   : > { %2662 = vmatpush3.bf16.msra.mxu1 %v3153_v54 }
 0x205   : > { %2663 = vmatprep.subr.bf16.mxu1 %v2790_v3 }
 0x208   : > { %2665 = vmatpush3.bf16.msra.mxu1 %v3163_v61 }
 0x209   : > { %2666 = vmatprep.subr.bf16.mxu1 %v2790_v3 }
 0x20c   : > { %2668 = vmatpush3.bf16.msra.mxu1 %v3173_v2 }
 0x20d   : > { %2669 = vmatprep.subr.bf16.mxu1 %v2790_v3 }
 0x210   : > { %2671 = vmatpush3.bf16.msra.mxu1 %v3183_v35 }
 0x211   : > { %2672 = vmatprep.subr.bf16.mxu1 %v2790_v3 }
 0x214   : > { %2674 = vmatpush3.bf16.msra.mxu1 %v3193_v30 }
 0x215   : > { %2675 = vmatprep.subr.bf16.mxu1 %v2790_v3 }
 0x218   : > { %2677 = vmatpush3.bf16.msra.mxu1 %v3229_v23 }
 0x219   : > { %2678 = vmatprep.subr.bf16.mxu1 %v2790_v3 }
 0x21b   : > { %2366 = vmatmul.mubr.f32.vlgmr.msra.gmra.mrb[6].mxu1 %v1107_v46 }
 0x21c   : > { %2680 = vmatpush3.bf16.msra.mxu1 %v2679_v18  ;;  %2400 = vmatprep.mubr.msk.f32.mxu1 %vm2791_vm0, %v2792_v8 }
 0x21d   : > { %2681 = vmatprep.subr.bf16.mxu1 %v2790_v3 }
 0x220   : > { %2683 = vmatpush3.bf16.msra.mxu1 %v2682_v52 }
 0x221   : > { %2684 = vmatprep.subr.bf16.mxu1 %v2790_v3 }
 0x224   : > { %2686 = vmatpush3.bf16.msra.mxu1 %v2685_v7 }
 0x225   : > { %2687 = vmatprep.subr.bf16.mxu1 %v2790_v3 }
 0x228   : > { %2689 = vmatpush3.bf16.msra.mxu1 %v2688_v9 }
 0x229   : > { %2690 = vmatprep.subr.bf16.mxu1 %v2790_v3 }
 0x22c   : > { %2692 = vmatpush3.bf16.msra.mxu1 %v2691_v22 }
 0x22d   : > { %2693 = vmatprep.subr.bf16.mxu1 %v2790_v3 }
 0x230   : > { %2695 = vmatpush3.bf16.msra.mxu1 %v2694_v14 }
 0x231   : > { %2696 = vmatprep.subr.bf16.mxu1 %v2790_v3 }
 0x234   : > { %2698 = vmatpush3.bf16.msra.mxu1 %v2697_v10 }
 0x235   : > { %2699 = vmatprep.subr.bf16.mxu1 %v2790_v3 }
 0x238   : > { %2701 = vmatpush3.bf16.msra.mxu1 %v2700_v33 }
 0x239   : > { %2702 = vmatprep.subr.bf16.mxu1 %v2790_v3 }
 0x23b   : > { %2401 = vmatmul.mubr.f32.vlgmr.msra.gmra.mrb[8].mxu1 %v3322_v43 }
 0x23c   : > { %2704 = vmatpush3.bf16.msra.mxu1 %v3052_v6  ;;  %2435 = vmatprep.mubr.msk.f32.mxu1 %vm2791_vm0, %v2792_v8 }
 0x23d   : > { %2705 = vmatprep.subr.bf16.mxu1 %v2790_v3 }
 0x240   : > { %2707 = vmatpush3.bf16.msra.mxu1 %v3143_v38 }
 0x241   : > { %2708 = vmatprep.subr.bf16.mxu1 %v2790_v3 }
 0x244   : > { %2710 = vmatpush3.bf16.msra.mxu1 %v3153_v54 }
 0x245   : > { %2711 = vmatprep.subr.bf16.mxu1 %v2790_v3 }
 0x248   : > { %2713 = vmatpush3.bf16.msra.mxu1 %v3163_v61 }
 0x249   : > { %2714 = vmatprep.subr.bf16.mxu1 %v2790_v3 }
 0x24c   : > { %2716 = vmatpush3.bf16.msra.mxu1 %v3173_v2 }
 0x24d   : > { %2717 = vmatprep.subr.bf16.mxu1 %v2790_v3 }
 0x250   : > { %2719 = vmatpush3.bf16.msra.mxu1 %v3183_v35 }
 0x251   : > { %2720 = vmatprep.subr.bf16.mxu1 %v2790_v3 }
 0x254   : > { %2722 = vmatpush3.bf16.msra.mxu1 %v3193_v30 }
 0x255   : > { %2723 = vmatprep.subr.bf16.mxu1 %v2790_v3  ;;  %v1810_v3 = vld [vmem:[%s3448_s4] ss:$0 sm:$0xff] }
 0x258   : > { %2725 = vmatpush3.bf16.msra.mxu1 %v3229_v23 }
 0x25b   : > { %2436 = vmatmul.mubr.f32.vlgmr.msra.gmra.mrb[10].mxu1 %v3322_v43 }
 0x28e   : > { %v1111_v8 = vpop.f32.mrb[0].mxu1 }
 0x28f   : > { %v2262_v6 = vpop.f32.mrb[1].mxu1 }
 0x2ae   : > { %v1262_v38 = vpop.f32.mrb[2].mxu1 }
 0x2af   : > { %v1263_v54 = vadd.f32 %v1262_v38, %v1111_v8  ;;  %v2297_v61 = vpop.f32.mrb[3].mxu1 }
 0x2ce   : > { %v1366_v2 = vpop.f32.mrb[4].mxu1 }
 0x2cf   : > { %v1367_v56 = vadd.f32 %v1366_v2, %v1263_v54  ;;  %v2332_v19 = vpop.f32.mrb[5].mxu1 }
 0x2ee   : > { %v1455_v35 = vpop.f32.mrb[6].mxu1 }
 0x2ef   : > { %v1456_v20 = vadd.f32 %v1455_v35, %v1367_v56  ;;  %v2367_v21 = vpop.f32.mrb[7].mxu1 }
 0x30e   : > { %v1574_v27 = vpop.f32.mrb[8].mxu1 }
 0x30f   : > { %v1575_v30 = vadd.f32 %v1574_v27, %v1456_v20  ;;  %v2402_v4 = vpop.f32.mrb[9].mxu1 }
 0x32e   : > { %v1661_v23 = vpop.f32.mrb[10].mxu1 }
 0x32f   : > { %v1662_v12 = vadd.f32 %v1661_v23, %v1575_v30  ;;  %v2437_v13 = vpop.f32.mrb[11].mxu1 }
 0x331   : > { %v1665_v59 = vadd.f32 %v1810_v3, %v1662_v12 }
 0x333   : > { %1666 = vst [vmem:[%s324_s10] sm:$0xff] %v1665_v59 }
 0x334 PF: > { %s15_s20 = sadd.s32 1, %s2788_s20   ;;  %s3466_s18 = smov %s2784_s19 }
 0x335   : > { %p12_p5 = scmp.ge.s32.totalorder %s15_s20, 4   ;;  %s3467_s19 = smov %s3469_s21 }
 0x337   :  { %14 = sbr.rel (!%p12_p5) target bundleno = 2 (0x2), region = 86 }

</bundles_post_ra>
